<compile_context>
chip_gen: v5e
topology: v5e:2x2
jax: 0.10.0
libtpu: 0.0.40
codegen_flags: <defaults>
</compile_context>

<pallas_src>
import functools

import jax
import jax.numpy as jnp
from jax.experimental import pallas as pl
from jax.experimental.pallas import tpu as pltpu

SUB_ROWS = 128   # rows per inner compute chunk (keeps h1/h2 live ranges small)
LANE = 128       # TPU lane width


def _round_up(x, m):
    return (x + m - 1) // m * m


def mlp_kernel(x_ref, w1_ref, b1_ref, w2_ref, b2_ref, w3_ref, b3_ref, o_ref,
               *, n_rows):
    tile_n = x_ref.shape[0]          # static block row count
    out_dim = o_ref.shape[1]         # true output width (un-padded)
    base = pl.program_id(0) * tile_n

    # Biases are tiny (<= 1 vreg each): load once per grid step, broadcast in the adds.
    b1 = b1_ref[...]
    b2 = b2_ref[...]
    b3 = b3_ref[...]

    # Fully unrolled static loop over 128-row sub-chunks.  Each chunk is gated
    # by pl.when so chunks entirely past the valid rows of a ragged last tile
    # are skipped; a chunk straddling the boundary computes garbage tail rows,
    # but Pallas only writes back in-bounds rows of the output block.
    for s in range(tile_n // SUB_ROWS):
        @pl.when(base + s * SUB_ROWS < n_rows)
        def _(s=s):
            r = s * SUB_ROWS
            # f32 rows streamed from HBM; bf16 cast happens here (free filler).
            xs = x_ref[pl.ds(r, SUB_ROWS), :].astype(jnp.bfloat16)
            # fc1 + ReLU (bf16 MXU inputs, f32 accumulation, f32 epilogue)
            h1 = jnp.dot(xs, w1_ref[...], preferred_element_type=jnp.float32)
            h1 = jnp.maximum(h1 + b1, 0.0)
            # fc2 + ReLU
            h2 = jnp.dot(h1.astype(jnp.bfloat16), w2_ref[...],
                         preferred_element_type=jnp.float32)
            h2 = jnp.maximum(h2 + b2, 0.0)
            # fc3 on 128 zero-padded output lanes (clean MXU shape), then store
            # only the true output_dim columns (small masked vst, few HBM bytes).
            out = jnp.dot(h2.astype(jnp.bfloat16), w3_ref[...],
                          preferred_element_type=jnp.float32)
            out = out + b3
            o_ref[pl.ds(r, SUB_ROWS), :] = out[:, :out_dim].astype(o_ref.dtype)


def node_classifier_forward(x, params, *, tile_n=1024):
    """Fused forward pass of NodeClassifier.

    x: [N, input_dim] float32
    params: w1/b1, w2/b2, w3/b3 with w_i stored as [in, out], b_i as [1, out].
    Returns [N, output_dim] float32 logits.
    """
    w1, b1 = params["w1"], params["b1"]
    w2, b2 = params["w2"], params["b2"]
    w3, b3 = params["w3"], params["b3"]

    n, input_dim = x.shape
    hidden1 = w1.shape[1]
    hidden2 = w2.shape[1]
    output_dim = w3.shape[1]

    # Row tile: multiple of SUB_ROWS; ensure >= 2 grid steps when possible so
    # ("parallel",) semantics can shard rows across v7x's two TensorCores.
    tile_n = max(SUB_ROWS, _round_up(tile_n, SUB_ROWS))
    if n > SUB_ROWS:
        tile_n = min(tile_n, _round_up(pl.cdiv(n, 2), SUB_ROWS))
    else:
        tile_n = SUB_ROWS
    grid = (pl.cdiv(n, tile_n),)

    # fc3 weights/bias zero-padded to 128 output lanes for a clean MXU dot; the
    # kernel slices back to output_dim before the store, so HBM only sees the
    # true output width.
    out_lanes = _round_up(output_dim, LANE)
    if out_lanes != output_dim:
        w3 = jnp.pad(w3, ((0, 0), (0, out_lanes - output_dim)))
        b3 = jnp.pad(b3, ((0, 0), (0, out_lanes - output_dim)))

    # Weights bf16 (tiny one-time cast; native MXU input).  x stays f32 at the
    # boundary (cast happens inside the kernel).  Biases stay f32.
    w1_bf = w1.astype(jnp.bfloat16)
    w2_bf = w2.astype(jnp.bfloat16)
    w3_bf = w3.astype(jnp.bfloat16)
    b1_f = b1.reshape(1, hidden1).astype(jnp.float32)
    b2_f = b2.reshape(1, hidden2).astype(jnp.float32)
    b3_f = b3.reshape(1, out_lanes).astype(jnp.float32)

    full = lambda a: pl.BlockSpec(a.shape, lambda i: (0, 0))

    flops = 2 * n * (input_dim * hidden1 + hidden1 * hidden2
                     + hidden2 * output_dim)
    bytes_accessed = (
        int(x.size) * x.dtype.itemsize            # stream f32 x in
        + n * output_dim * 4                      # write f32 logits (true width)
        + sum(int(a.size) * a.dtype.itemsize
              for a in (w1_bf, w2_bf, w3_bf, b1_f, b2_f, b3_f))
    )

    kernel = functools.partial(mlp_kernel, n_rows=n)

    return pl.pallas_call(
        kernel,
        out_shape=jax.ShapeDtypeStruct((n, output_dim), jnp.float32),
        grid_spec=pl.GridSpec(
            grid=grid,
            in_specs=[
                pl.BlockSpec((tile_n, input_dim), lambda i: (i, 0)),  # x rows
                full(w1_bf), full(b1_f),
                full(w2_bf), full(b2_f),
                full(w3_bf), full(b3_f),
            ],
            out_specs=pl.BlockSpec((tile_n, output_dim), lambda i: (i, 0)),
        ),
        compiler_params=pltpu.CompilerParams(
            dimension_semantics=("parallel",)),
        cost_estimate=pl.CostEstimate(
            flops=flops, transcendentals=0, bytes_accessed=bytes_accessed),
    )(x, w1_bf, b1_f, w2_bf, b2_f, w3_bf, b3_f)


def init_params(key, input_dim, output_dim):
    """Deterministic init mirroring nn.Linear's U(-1/sqrt(fan_in), 1/sqrt(fan_in))."""
    dims = [(input_dim, 128), (128, 64), (64, output_dim)]
    params = {}
    for idx, (fan_in, fan_out) in enumerate(dims, start=1):
        key, kw, kb = jax.random.split(key, 3)
        bound = 1.0 / jnp.sqrt(jnp.float32(fan_in))
        params[f"w{idx}"] = jax.random.uniform(
            kw, (fan_in, fan_out), jnp.float32, -bound, bound)
        params[f"b{idx}"] = jax.random.uniform(
            kb, (1, fan_out), jnp.float32, -bound, bound)
    return params


def reference_forward(x, params):
    h = jnp.maximum(x @ params["w1"] + params["b1"], 0.0)
    h = jnp.maximum(h @ params["w2"] + params["b2"], 0.0)
    return h @ params["w3"] + params["b3"]


if __name__ == "__main__":
    key = jax.random.PRNGKey(0)
    input_dim, output_dim = 32, 10
    n_nodes = 200  # not a multiple of the tile -> exercises the ragged-tile path

    kx, kp = jax.random.split(key)
    x = jax.random.normal(kx, (n_nodes, input_dim), jnp.float32)
    params = init_params(kp, input_dim, output_dim)

    out = node_classifier_forward(x, params)
    out = jax.block_until_ready(out)

    ref = reference_forward(x, params)
    assert out.shape == (n_nodes, output_dim)
    # bf16 MXU inputs with f32 accumulation -> loose tolerance vs pure-f32 reference.
    assert jnp.allclose(out, ref, atol=3e-2, rtol=3e-2), (
        float(jnp.max(jnp.abs(out - ref))))

    print("KERNEL_OK")
</pallas_src>

<mosaic_0001>
module attributes {stable_mosaic.version = 11 : i64} {
  func.func @mlp_kernel(%arg0: i32, %arg1: memref<128x32xf32, #tpu.memory_space<vmem>>, %arg2: memref<32x128xbf16, #tpu.memory_space<vmem>>, %arg3: memref<1x128xf32, #tpu.memory_space<vmem>>, %arg4: memref<128x64xbf16, #tpu.memory_space<vmem>>, %arg5: memref<1x64xf32, #tpu.memory_space<vmem>>, %arg6: memref<64x128xbf16, #tpu.memory_space<vmem>>, %arg7: memref<1x128xf32, #tpu.memory_space<vmem>>, %arg8: memref<128x10xf32, #tpu.memory_space<vmem>>) attributes {dimension_semantics = [#tpu.dimension_semantics<parallel>], iteration_bounds = array<i64: 2>, scalar_prefetch = 0 : i64, scratch_operands = 0 : i64, tpu.core_type = #tpu.core_type<tc>, window_params = [{transform_indices = @transform_0, window_bounds = array<i64: 128, 32>}, {pipeline_mode = #tpu.pipeline_mode<synchronous>, transform_indices = @transform_1, window_bounds = array<i64: 32, 128>}, {pipeline_mode = #tpu.pipeline_mode<synchronous>, transform_indices = @transform_2, window_bounds = array<i64: 1, 128>}, {pipeline_mode = #tpu.pipeline_mode<synchronous>, transform_indices = @transform_3, window_bounds = array<i64: 128, 64>}, {pipeline_mode = #tpu.pipeline_mode<synchronous>, transform_indices = @transform_4, window_bounds = array<i64: 1, 64>}, {pipeline_mode = #tpu.pipeline_mode<synchronous>, transform_indices = @transform_5, window_bounds = array<i64: 64, 128>}, {pipeline_mode = #tpu.pipeline_mode<synchronous>, transform_indices = @transform_6, window_bounds = array<i64: 1, 128>}, {transform_indices = @transform_7, window_bounds = array<i64: 128, 10>}]} {
    %c128_i32 = arith.constant 128 : i32
    %0 = arith.muli %arg0, %c128_i32 : i32
    %c0 = arith.constant 0 : index
    %c0_0 = arith.constant 0 : index
    %1 = vector.load %arg3[%c0, %c0_0] : memref<1x128xf32, #tpu.memory_space<vmem>>, vector<1x128xf32>
    %c0_1 = arith.constant 0 : index
    %c0_2 = arith.constant 0 : index
    %2 = vector.load %arg5[%c0_1, %c0_2] : memref<1x64xf32, #tpu.memory_space<vmem>>, vector<1x64xf32>
    %c0_3 = arith.constant 0 : index
    %c0_4 = arith.constant 0 : index
    %3 = vector.load %arg7[%c0_3, %c0_4] : memref<1x128xf32, #tpu.memory_space<vmem>>, vector<1x128xf32>
    %c0_i32 = arith.constant 0 : i32
    %4 = arith.addi %0, %c0_i32 : i32
    %c200_i32 = arith.constant 200 : i32
    %5 = arith.cmpi slt, %4, %c200_i32 : i32
    %6 = arith.extui %5 : i1 to i32
    %c0_i32_5 = arith.constant 0 : i32
    %7 = arith.cmpi ne, %6, %c0_i32_5 : i32
    scf.if %7 {
      %c0_6 = arith.constant 0 : index
      %c0_7 = arith.constant 0 : index
      %8 = vector.load %arg1[%c0_6, %c0_7] : memref<128x32xf32, #tpu.memory_space<vmem>>, vector<128x32xf32>
      %9 = arith.truncf %8 : vector<128x32xf32> to vector<128x32xbf16>
      %c0_8 = arith.constant 0 : index
      %c0_9 = arith.constant 0 : index
      %10 = vector.load %arg2[%c0_8, %c0_9] : memref<32x128xbf16, #tpu.memory_space<vmem>>, vector<32x128xbf16>
      %cst = arith.constant dense<0.000000e+00> : vector<128x128xf32>
      %11 = tpu.matmul %9, %10, %cst {dimension_numbers = #tpu.dot_dimension_numbers<[1], [0], [0], [1], [0, 0, 1, 1], [], []>} : vector<128x32xbf16>, vector<32x128xbf16>, vector<128x128xf32> -> vector<128x128xf32>
      %12 = vector.broadcast %1 : vector<1x128xf32> to vector<128x128xf32>
      %13 = arith.addf %11, %12 : vector<128x128xf32>
      %cst_10 = arith.constant 0.000000e+00 : f32
      %14 = vector.broadcast %cst_10 : f32 to vector<128x128xf32>
      %15 = arith.maximumf %13, %14 : vector<128x128xf32>
      %16 = arith.truncf %15 : vector<128x128xf32> to vector<128x128xbf16>
      %c0_11 = arith.constant 0 : index
      %c0_12 = arith.constant 0 : index
      %17 = vector.load %arg4[%c0_11, %c0_12] : memref<128x64xbf16, #tpu.memory_space<vmem>>, vector<128x64xbf16>
      %cst_13 = arith.constant dense<0.000000e+00> : vector<128x64xf32>
      %18 = tpu.matmul %16, %17, %cst_13 {dimension_numbers = #tpu.dot_dimension_numbers<[1], [0], [0], [1], [0, 0, 1, 1], [], []>} : vector<128x128xbf16>, vector<128x64xbf16>, vector<128x64xf32> -> vector<128x64xf32>
      %19 = vector.broadcast %2 : vector<1x64xf32> to vector<128x64xf32>
      %20 = arith.addf %18, %19 : vector<128x64xf32>
      %cst_14 = arith.constant 0.000000e+00 : f32
      %21 = vector.broadcast %cst_14 : f32 to vector<128x64xf32>
      %22 = arith.maximumf %20, %21 : vector<128x64xf32>
      %23 = arith.truncf %22 : vector<128x64xf32> to vector<128x64xbf16>
      %c0_15 = arith.constant 0 : index
      %c0_16 = arith.constant 0 : index
      %24 = vector.load %arg6[%c0_15, %c0_16] : memref<64x128xbf16, #tpu.memory_space<vmem>>, vector<64x128xbf16>
      %cst_17 = arith.constant dense<0.000000e+00> : vector<128x128xf32>
      %25 = tpu.matmul %23, %24, %cst_17 {dimension_numbers = #tpu.dot_dimension_numbers<[1], [0], [0], [1], [0, 0, 1, 1], [], []>} : vector<128x64xbf16>, vector<64x128xbf16>, vector<128x128xf32> -> vector<128x128xf32>
      %26 = vector.broadcast %3 : vector<1x128xf32> to vector<128x128xf32>
      %27 = arith.addf %25, %26 : vector<128x128xf32>
      %28 = vector.extract_strided_slice %27 {offsets = [0, 0], sizes = [128, 10], strides = [1, 1]} : vector<128x128xf32> to vector<128x10xf32>
      %c0_18 = arith.constant 0 : index
      %c0_19 = arith.constant 0 : index
      %29 = vector.load %arg8[%c0_18, %c0_19] : memref<128x10xf32, #tpu.memory_space<vmem>>, vector<128x10xf32>
      tpu.vector_store %arg8[%c0_18, %c0_19], %28 {strides = array<i32>} : memref<128x10xf32, #tpu.memory_space<vmem>>, vector<128x10xf32>,
    } else {
    }
    return
  }
  func.func @transform_0(%arg0: i32) -> (i32, i32) {
    %c0_i32 = arith.constant 0 : i32
    %c0_i32_0 = arith.constant 0 : i32
    return %arg0, %c0_i32 : i32, i32
  }
  func.func @transform_1(%arg0: i32) -> (i32, i32) {
    %c0_i32 = arith.constant 0 : i32
    %c0_i32_0 = arith.constant 0 : i32
    %c0_i32_1 = arith.constant 0 : i32
    return %c0_i32, %c0_i32_0 : i32, i32
  }
  func.func @transform_2(%arg0: i32) -> (i32, i32) {
    %c0_i32 = arith.constant 0 : i32
    %c0_i32_0 = arith.constant 0 : i32
    %c0_i32_1 = arith.constant 0 : i32
    return %c0_i32, %c0_i32_0 : i32, i32
  }
  func.func @transform_3(%arg0: i32) -> (i32, i32) {
    %c0_i32 = arith.constant 0 : i32
    %c0_i32_0 = arith.constant 0 : i32
    %c0_i32_1 = arith.constant 0 : i32
    return %c0_i32, %c0_i32_0 : i32, i32
  }
  func.func @transform_4(%arg0: i32) -> (i32, i32) {
    %c0_i32 = arith.constant 0 : i32
    %c0_i32_0 = arith.constant 0 : i32
    %c0_i32_1 = arith.constant 0 : i32
    return %c0_i32, %c0_i32_0 : i32, i32
  }
  func.func @transform_5(%arg0: i32) -> (i32, i32) {
    %c0_i32 = arith.constant 0 : i32
    %c0_i32_0 = arith.constant 0 : i32
    %c0_i32_1 = arith.constant 0 : i32
    return %c0_i32, %c0_i32_0 : i32, i32
  }
  func.func @transform_6(%arg0: i32) -> (i32, i32) {
    %c0_i32 = arith.constant 0 : i32
    %c0_i32_0 = arith.constant 0 : i32
    %c0_i32_1 = arith.constant 0 : i32
    return %c0_i32, %c0_i32_0 : i32, i32
  }
  func.func @transform_7(%arg0: i32) -> (i32, i32) {
    %c0_i32 = arith.constant 0 : i32
    %c0_i32_0 = arith.constant 0 : i32
    return %arg0, %c0_i32 : i32, i32
  }
}

</mosaic_0001>

<bundles_post_ra>
// kernel: tpu_custom_call.1
= control target key start
LH: loop header
LB: loop body
LE: loop exit
PB: predicated region body
PF: predicated region fallthrough
CT: control target
= control target key end

     0   :  { %s1335_s24 = smov 0   ;;  %s1337_s25 = smov 0   ;;  %s1623_s0 = inlined_call_operand.vmem [shape: f32[200,32], index: 0, kind: input, shape index: {}]   ;;  %s1624_s1 = inlined_call_operand.vmem [shape: bf16[32,128], index: 1, kind: input, shape index: {}]   ;;  %s1625_s2 = inlined_call_operand.vmem [shape: f32[1,128], index: 2, kind: input, shape index: {}]   ;;  %s1626_s3 = inlined_call_operand.vmem [shape: bf16[128,64], index: 3, kind: input, shape index: {}]   ;;  %s1627_s4 = inlined_call_operand.vmem [shape: f32[1,64], index: 4, kind: input, shape index: {}]   ;;  %s1628_s5 = inlined_call_operand.vmem [shape: bf16[64,128], index: 5, kind: input, shape index: {}]   ;;  %s1629_s6 = inlined_call_operand.vmem [shape: f32[1,128], index: 6, kind: input, shape index: {}]   ;;  %s1630_s7 = inlined_call_operand.vmem [shape: f32[200,10], index: 7, kind: output, shape index: {}]  }
   0x1   :  { %s1339_s26 = smov 0  }
   0x2 LB: > { %s1346_s27 = sadd.s32 4294967295, %s1261_s26   ;;  %s1348_s28 = sadd.s32 1, %s1261_s26   ;;  %s1261_s26 = sphi %s1339_s26, %s1639_s26   ;;  %s1257_s25 = sphi %s1337_s25, %s1638_s25   ;;  %s1253_s24 = sphi %s1335_s24, %s1637_s24  }
   0x3   : > { %s173_s29 = ssub.s32 %s1261_s26, %s1348_s28  ;;  %s176_s30 = sadd.s32 1, %s1257_s25 }
   0x4   : > { %p174_p0 = scmp.eq.s32.totalorder %s173_s29, 0  ;;  %p186_p1 = scmp.ne.s32.totalorder %s1257_s25, %s1253_s24 }
   0x5   : > { %p187_p2 = scmp.eq.s32.totalorder %s1346_s27, 1  ;;  %p995_p3 = scmp.ge.s32.totalorder %s1261_s26, 1 }
   0x6   : > { %s1355_s8 = scalar_select %p174_p0, %s1257_s25, %s176_s30  }
   0x7   : > { %p1357_p4 = por %p187_p2, %p186_p1  ;;  %p246_p5 = scmp.lt.s32.totalorder %s1261_s26, 3 }
   0x9   : > { %p247_p6 = pnand %p995_p3, %p246_p5 }
   0xa   : > { %s278_s10 = sand.u32 (!%p247_p6), 1, %s1253_s24   ;;  %s1362_s11 = sshll.u32 (!%p247_p6), %s1346_s27, 4 }
   0xb   : > { %250 = sbr.rel (%p247_p6) target bundleno = 624 (0x270), region = 48  ;;  %s996_s16 = sshll.u32 (!%p247_p6), %s278_s10, 7 }
   0xc   : > { %p286_p7 = scmp.lt.s32.totalorder (!%p247_p6), %s1362_s11, 24  ;;  %s999_s19 = sshll.u32 (!%p247_p6), %s1346_s27, 7 }
   0xd   : > { %s1387_s26 = scalar_lea.vmem (!%p247_p6), [#allocation2], %s996_s16   ;;  %p1000_p8 = scmp.ge.s32.totalorder (!%p247_p6), %s999_s19, 200 }
  0x10   : > { %v1367_v0 = vld [vmem:[%s1625_s2] sm:$0x1]  ;;  %s287_s20 = scalar_select %p286_p7, %s1362_s11, 24 }
  0x11   : > { %v1372_v1 = vld [vmem:[%s1627_s4] sm:$0x1]  ;;  %308 = sbr.rel (%p1000_p8) target bundleno = 571 (0x23b), region = 52 }
  0x12   : > { %v1378_v2 = vld [vmem:[%s1629_s6] sm:$0x1]  ;;  %s998_s21 = sshll.u32 %s287_s20, 3 }
  0x13   : > { %s1385_s24 = scalar_lea.vmem %s1623_s0, %s998_s21 }
  0x16   : > { %v1091_v3 = vld [vmem:[%s1624_s1 + $0x8] sm:$0xff]  ;;  %v1090_v4 = vld [vmem:[%s1624_s1] sm:$0xff]  ;;  %vm352_vm0 = vcmask 261120   ;;  %v311_v8 = vld [vmem:[%s1385_s24 + $0x10] sm:$0xff]  ;;  %v1446_v38 = vperm.slane %v1367_v0, 0  ;;  %vm625_vm1 = vcmask 523264  }
  0x17   : > { %383 = vmatpush.bf16.msra.mxu0 %v1091_v3  ;;  %v309_v5 = vld [vmem:[%s1385_s24] sm:$0xff]  ;;  %v310_v6 = vld [vmem:[%s1385_s24 + $0x8] sm:$0xff]  ;;  %v312_v9 = vld [vmem:[%s1385_s24 + $0x18] sm:$0xff]  ;;  %vm699_vm2 = vcmask 80896  }
  0x18   : > { %v325_v7 = vpack.c.bf16 %v310_v6, %v309_v5  ;;  %v326_v10 = vpack.c.bf16 %v312_v9, %v311_v8  ;;  %v313_v11 = vld [vmem:[%s1385_s24 + $0x20] sm:$0xff]  ;;  %v314_v12 = vld [vmem:[%s1385_s24 + $0x28] sm:$0xff]  ;;  %v315_v14 = vld [vmem:[%s1385_s24 + $0x30] sm:$0xff] }
  0x19   : > { %v327_v13 = vpack.c.bf16 %v314_v12, %v313_v11  ;;  %v316_v15 = vld [vmem:[%s1385_s24 + $0x38] sm:$0xff]  ;;  %v317_v17 = vld [vmem:[%s1385_s24 + $0x40] sm:$0xff]  ;;  %v318_v18 = vld [vmem:[%s1385_s24 + $0x48] sm:$0xff] }
  0x1a   : > { %v328_v16 = vpack.c.bf16 %v316_v15, %v315_v14  ;;  %v329_v19 = vpack.c.bf16 %v318_v18, %v317_v17  ;;  %v1099_v20 = vld [vmem:[%s1626_s3 + $0x38] sm:$0xff]  ;;  %v319_v21 = vld [vmem:[%s1385_s24 + $0x50] sm:$0xff]  ;;  %v1097_v25 = vld [vmem:[%s1626_s3 + $0x28] sm:$0xff] }
  0x1b   : > { %384 = vmatpush.bf16.msra.mxu0 %v1090_v4  ;;  %517 = vmatpush.bf16.msra.mxu1 %v1099_v20  ;;  %v320_v22 = vld [vmem:[%s1385_s24 + $0x58] sm:$0xff]  ;;  %v1098_v24 = vld [vmem:[%s1626_s3 + $0x30] sm:$0xff]  ;;  %v1096_v26 = vld [vmem:[%s1626_s3 + $0x20] sm:$0xff] }
  0x1c   : > { %1107 = vmatpush.bf16.msra.mxu3 %v1099_v20  ;;  %v330_v23 = vpack.c.bf16 %v320_v22, %v319_v21  ;;  %v321_v27 = vld [vmem:[%s1385_s24 + $0x60] sm:$0xff]  ;;  %v322_v28 = vld [vmem:[%s1385_s24 + $0x68] sm:$0xff]  ;;  %v1095_v29 = vld [vmem:[%s1626_s3 + $0x18] sm:$0xff] }
  0x1d   : > { %v331_v30 = vpack.c.bf16 %v322_v28, %v321_v27  ;;  %v1094_v31 = vld [vmem:[%s1626_s3 + $0x10] sm:$0xff]  ;;  %v1093_v32 = vld [vmem:[%s1626_s3 + $0x8] sm:$0xff]  ;;  %v1092_v33 = vld [vmem:[%s1626_s3] sm:$0xff] }
  0x1e   : > { %1009 = vmatmul.msk.bf16.vlgmr.msra.gmra.mxu0 %vm352_vm0, %v325_v7  ;;  %v323_v34 = vld [vmem:[%s1385_s24 + $0x70] sm:$0xff]  ;;  %v324_v35 = vld [vmem:[%s1385_s24 + $0x78] sm:$0xff]  ;;  %v1101_v28 = vld [vmem:[%s1628_s5 + $0x8] sm:$0xff] }
  0x1f   : > { %518 = vmatpush.bf16.msra.mxu1 %v1098_v24  ;;  %v332_v36 = vpack.c.bf16 %v324_v35, %v323_v34  ;;  %v1103_v22 = vld [vmem:[%s1628_s5 + $0x18] sm:$0xff] }
  0x20   : > { %1108 = vmatpush.bf16.msra.mxu3 %v1098_v24  ;;  %654 = vmatpush.bf16.msra.mxu2 %v1103_v22 }
  0x23   : > { %519 = vmatpush.bf16.msra.mxu1 %v1097_v25 }
  0x24   : > { %1109 = vmatpush.bf16.msra.mxu3 %v1097_v25 }
  0x27   : > { %520 = vmatpush.bf16.msra.mxu1 %v1096_v26 }
  0x28   : > { %1110 = vmatpush.bf16.msra.mxu3 %v1096_v26  ;;  %v1102_v26 = vld [vmem:[%s1628_s5 + $0x10] sm:$0xff] }
  0x29   : > { %655 = vmatpush.bf16.msra.mxu2 %v1102_v26 }
  0x2b   : > { %521 = vmatpush.bf16.msra.mxu1 %v1095_v29 }
  0x2c   : > { %1111 = vmatpush.bf16.msra.mxu3 %v1095_v29  ;;  %v1100_v29 = vld [vmem:[%s1628_s5] sm:$0xff] }
  0x2d   : > { %656 = vmatpush.bf16.msra.mxu2 %v1101_v28 }
  0x2e   : > { %1010 = vmatmul.msk.bf16.gmra.mxu0 %vm352_vm0, %v326_v10 }
  0x2f   : > { %522 = vmatpush.bf16.msra.mxu1 %v1094_v31 }
  0x30   : > { %1112 = vmatpush.bf16.msra.mxu3 %v1094_v31 }
  0x31   : > { %657 = vmatpush.bf16.msra.mxu2 %v1100_v29 }
  0x33   : > { %523 = vmatpush.bf16.msra.mxu1 %v1093_v32 }
  0x34   : > { %1113 = vmatpush.bf16.msra.mxu3 %v1093_v32 }
  0x37   : > { %524 = vmatpush.bf16.msra.mxu1 %v1092_v33 }
  0x38   : > { %1114 = vmatpush.bf16.msra.mxu3 %v1092_v33 }
  0x3c   : > { %1115 = vmatpush.bf16.msrb.mxu3 %v1103_v22 }
  0x3e   : > { %1011 = vmatmul.msk.bf16.gmra.mxu0 %vm352_vm0, %v327_v13 }
  0x40   : > { %1116 = vmatpush.bf16.msrb.mxu3 %v1102_v26 }
  0x44   : > { %1117 = vmatpush.bf16.msrb.mxu3 %v1101_v28 }
  0x48   : > { %1118 = vmatpush.bf16.msrb.mxu3 %v1100_v29 }
  0x4e   : > { %1012 = vmatmul.msk.bf16.gmra.mxu0 %vm352_vm0, %v328_v16 }
  0x5e   : > { %1013 = vmatmul.msk.bf16.gmra.mxu0 %vm352_vm0, %v329_v19 }
  0x6e   : > { %1014 = vmatmul.msk.bf16.gmra.mxu0 %vm352_vm0, %v330_v23 }
  0x7e   : > { %1015 = vmatmul.msk.bf16.gmra.mxu0 %vm352_vm0, %v331_v30 }
  0x8e   : > { %1016 = vmatmul.msk.bf16.gmra.mxu0 %vm352_vm0, %v332_v36 }
  0x9b   : > { %v386_v37 = vpop.f32.mrf.mxu0 }
  0x9c   : > { %v387_v39 = vadd.f32 %v386_v37, %v1446_v38  ;;  %v467_v37 = vperm.slane %v1372_v1, 0 }
  0x9e   : > { %v426_v42 = vmax.f32 %v387_v39, 0.0 }
  0xa3   : > { %v388_v40 = vpop.f32.mrf.mxu0 }
  0xa4   : > { %v389_v41 = vadd.f32 %v388_v40, %v1446_v38 }
  0xa6   : > { %v427_v43 = vmax.f32 %v389_v41, 0.0 }
  0xa8   : > { %v442_v44 = vpack.c.bf16 %v427_v43, %v426_v42 }
  0xaa   : > { %525 = vmatmul.bf16.vlgmr.msra.gmra.mxu1 %v442_v44 }
  0xab   : > { %v391_v45 = vpop.f32.mrf.mxu0 }
  0xac   : > { %v392_v46 = vadd.f32 %v391_v45, %v1446_v38 }
  0xae   : > { %v428_v49 = vmax.f32 %v392_v46, 0.0 }
  0xb3   : > { %v393_v47 = vpop.f32.mrf.mxu0 }
  0xb4   : > { %v394_v48 = vadd.f32 %v393_v47, %v1446_v38 }
  0xb6   : > { %v429_v50 = vmax.f32 %v394_v48, 0.0 }
  0xb8   : > { %v443_v51 = vpack.c.bf16 %v429_v50, %v428_v49 }
  0xba   : > { %530 = vmatmul.bf16.gmra.mxu1 %v443_v51 }
  0xbb   : > { %v396_v52 = vpop.f32.mrf.mxu0 }
  0xbc   : > { %v397_v53 = vadd.f32 %v396_v52, %v1446_v38 }
  0xbe   : > { %v430_v56 = vmax.f32 %v397_v53, 0.0 }
  0xc3   : > { %v398_v54 = vpop.f32.mrf.mxu0 }
  0xc4   : > { %v399_v55 = vadd.f32 %v398_v54, %v1446_v38 }
  0xc6   : > { %v431_v57 = vmax.f32 %v399_v55, 0.0 }
  0xc8   : > { %v444_v58 = vpack.c.bf16 %v431_v57, %v430_v56 }
  0xca   : > { %535 = vmatmul.bf16.gmra.mxu1 %v444_v58 }
  0xcb   : > { %v401_v59 = vpop.f32.mrf.mxu0 }
  0xcc   : > { %v402_v60 = vadd.f32 %v401_v59, %v1446_v38 }
  0xce   : > { %v432_v63 = vmax.f32 %v402_v60, 0.0 }
  0xd3   : > { %v403_v61 = vpop.f32.mrf.mxu0 }
  0xd4   : > { %v404_v62 = vadd.f32 %v403_v61, %v1446_v38 }
  0xd6   : > { %v433_v0 = vmax.f32 %v404_v62, 0.0 }
  0xd8   : > { %v445_v3 = vpack.c.bf16 %v433_v0, %v432_v63 }
  0xda   : > { %540 = vmatmul.bf16.gmra.mxu1 %v445_v3 }
  0xdb   : > { %v406_v4 = vpop.f32.mrf.mxu0 }
  0xdc   : > { %v407_v5 = vadd.f32 %v406_v4, %v1446_v38 }
  0xde   : > { %v434_v8 = vmax.f32 %v407_v5, 0.0 }
  0xe3   : > { %v408_v6 = vpop.f32.mrf.mxu0 }
  0xe4   : > { %v409_v7 = vadd.f32 %v408_v6, %v1446_v38 }
  0xe6   : > { %v435_v9 = vmax.f32 %v409_v7, 0.0 }
  0xe8   : > { %v446_v10 = vpack.c.bf16 %v435_v9, %v434_v8 }
  0xea   : > { %545 = vmatmul.bf16.gmra.mxu1 %v446_v10 }
  0xeb   : > { %v411_v11 = vpop.f32.mrf.mxu0 }
  0xec   : > { %v412_v12 = vadd.f32 %v411_v11, %v1446_v38 }
  0xee   : > { %v436_v15 = vmax.f32 %v412_v12, 0.0 }
  0xf3   : > { %v413_v13 = vpop.f32.mrf.mxu0 }
  0xf4   : > { %v414_v14 = vadd.f32 %v413_v13, %v1446_v38 }
  0xf6   : > { %v437_v16 = vmax.f32 %v414_v14, 0.0 }
  0xf8   : > { %v447_v17 = vpack.c.bf16 %v437_v16, %v436_v15 }
  0xfa   : > { %550 = vmatmul.bf16.gmra.mxu1 %v447_v17 }
  0xfb   : > { %v416_v18 = vpop.f32.mrf.mxu0 }
  0xfc   : > { %v417_v19 = vadd.f32 %v416_v18, %v1446_v38 }
  0xfe   : > { %v438_v23 = vmax.f32 %v417_v19, 0.0 }
 0x103   : > { %v418_v20 = vpop.f32.mrf.mxu0 }
 0x104   : > { %v419_v21 = vadd.f32 %v418_v20, %v1446_v38 }
 0x106   : > { %v439_v24 = vmax.f32 %v419_v21, 0.0 }
 0x108   : > { %v448_v25 = vpack.c.bf16 %v439_v24, %v438_v23 }
 0x10a   : > { %555 = vmatmul.bf16.vlgmr.msra.gmra.mxu3 %v448_v25 }
 0x10b   : > { %v421_v27 = vpop.f32.mrf.mxu0 }
 0x10c   : > { %v422_v30 = vadd.f32 %v421_v27, %v1446_v38 }
 0x10e   : > { %v440_v33 = vmax.f32 %v422_v30, 0.0  ;;  %v599_v30 = vperm.slane %v1378_v2, 0 }
 0x113   : > { %v423_v31 = vpop.f32.mrf.mxu0 }
 0x114   : > { %v424_v32 = vadd.f32 %v423_v31, %v1446_v38 }
 0x116   : > { %v441_v34 = vmax.f32 %v424_v32, 0.0 }
 0x118   : > { %v449_v35 = vpack.c.bf16 %v441_v34, %v440_v33 }
 0x11a   : > { %560 = vmatmul.bf16.gmra.mxu3 %v449_v35 }
 0x127   : > { %v526_v36 = vpop.f32.mrf.mxu1 }
 0x128   : > { %v527_v39 = vadd.f32 %v526_v36, %v467_v37 }
 0x12a   : > { %v566_v42 = vmax.f32 %v527_v39, 0.0 }
 0x12f   : > { %v528_v40 = vpop.f32.mrf.mxu1 }
 0x130   : > { %v529_v41 = vadd.f32 %v528_v40, %v467_v37 }
 0x132   : > { %v567_v43 = vmax.f32 %v529_v41, 0.0 }
 0x134   : > { %v582_v44 = vpack.c.bf16 %v567_v43, %v566_v42 }
 0x136   : > { %1065 = vmatmul.msk.bf16.vlgmr.msra.gmra.mxu2 %vm625_vm1, %v582_v44 }
 0x137   : > { %v531_v45 = vpop.f32.mrf.mxu1 }
 0x138   : > { %v532_v46 = vadd.f32 %v531_v45, %v467_v37 }
 0x13a   : > { %v568_v48 = vmax.f32 %v532_v46, 0.0 }
 0x13f   : > { %v533_v47 = vpop.f32.mrf.mxu1 }
 0x140   : > { %v534_v38 = vadd.f32 %v533_v47, %v467_v37 }
 0x142   : > { %v569_v49 = vmax.f32 %v534_v38, 0.0 }
 0x144   : > { %v583_v50 = vpack.c.bf16 %v569_v49, %v568_v48 }
 0x146   : > { %1066 = vmatmul.msk.bf16.gmra.mxu2 %vm625_vm1, %v583_v50 }
 0x147   : > { %v536_v51 = vpop.f32.mrf.mxu1 }
 0x148   : > { %v537_v1 = vadd.f32 %v536_v51, %v467_v37 }
 0x14a   : > { %v570_v54 = vmax.f32 %v537_v1, 0.0 }
 0x14f   : > { %v538_v52 = vpop.f32.mrf.mxu1 }
 0x150   : > { %v539_v53 = vadd.f32 %v538_v52, %v467_v37 }
 0x152   : > { %v571_v55 = vmax.f32 %v539_v53, 0.0 }
 0x154   : > { %v584_v56 = vpack.c.bf16 %v571_v55, %v570_v54 }
 0x156   : > { %1067 = vmatmul.msk.bf16.gmra.mxu2 %vm625_vm1, %v584_v56 }
 0x157   : > { %v541_v57 = vpop.f32.mrf.mxu1 }
 0x158   : > { %v542_v58 = vadd.f32 %v541_v57, %v467_v37 }
 0x15a   : > { %v572_v61 = vmax.f32 %v542_v58, 0.0 }
 0x15f   : > { %v543_v59 = vpop.f32.mrf.mxu1 }
 0x160   : > { %v544_v60 = vadd.f32 %v543_v59, %v467_v37 }
 0x162   : > { %v573_v62 = vmax.f32 %v544_v60, 0.0 }
 0x164   : > { %v585_v63 = vpack.c.bf16 %v573_v62, %v572_v61 }
 0x166   : > { %1068 = vmatmul.msk.bf16.gmra.mxu2 %vm625_vm1, %v585_v63 }
 0x167   : > { %v546_v0 = vpop.f32.mrf.mxu1 }
 0x168   : > { %v547_v3 = vadd.f32 %v546_v0, %v467_v37 }
 0x16a   : > { %v574_v6 = vmax.f32 %v547_v3, 0.0 }
 0x16f   : > { %v548_v4 = vpop.f32.mrf.mxu1 }
 0x170   : > { %v549_v5 = vadd.f32 %v548_v4, %v467_v37 }
 0x172   : > { %v575_v7 = vmax.f32 %v549_v5, 0.0 }
 0x174   : > { %v586_v8 = vpack.c.bf16 %v575_v7, %v574_v6 }
 0x176   : > { %1069 = vmatmul.msk.bf16.gmra.mxu2 %vm625_vm1, %v586_v8 }
 0x177   : > { %v551_v9 = vpop.f32.mrf.mxu1 }
 0x178   : > { %v552_v10 = vadd.f32 %v551_v9, %v467_v37 }
 0x17a   : > { %v576_v13 = vmax.f32 %v552_v10, 0.0 }
 0x17f   : > { %v553_v11 = vpop.f32.mrf.mxu1 }
 0x180   : > { %v554_v12 = vadd.f32 %v553_v11, %v467_v37 }
 0x182   : > { %v577_v14 = vmax.f32 %v554_v12, 0.0 }
 0x184   : > { %v587_v15 = vpack.c.bf16 %v577_v14, %v576_v13 }
 0x186   : > { %1070 = vmatmul.msk.bf16.gmra.mxu2 %vm625_vm1, %v587_v15 }
 0x18d   : > { %v556_v16 = vpop.f32.mrf.mxu3 }
 0x18e   : > { %v557_v17 = vadd.f32 %v556_v16, %v467_v37 }
 0x190   : > { %v578_v20 = vmax.f32 %v557_v17, 0.0 }
 0x195   : > { %v558_v18 = vpop.f32.mrf.mxu3 }
 0x196   : > { %v559_v19 = vadd.f32 %v558_v18, %v467_v37 }
 0x198   : > { %v579_v21 = vmax.f32 %v559_v19, 0.0 }
 0x19a   : > { %v588_v22 = vpack.c.bf16 %v579_v21, %v578_v20 }
 0x19c   : > { %1071 = vmatmul.msk.bf16.gmra.mxu2 %vm625_vm1, %v588_v22 }
 0x19d   : > { %v561_v23 = vpop.f32.mrf.mxu3 }
 0x19e   : > { %v562_v24 = vadd.f32 %v561_v23, %v467_v37 }
 0x1a0   : > { %v580_v27 = vmax.f32 %v562_v24, 0.0 }
 0x1a5   : > { %v563_v25 = vpop.f32.mrf.mxu3 }
 0x1a6   : > { %v564_v26 = vadd.f32 %v563_v25, %v467_v37 }
 0x1a8   : > { %v581_v28 = vmax.f32 %v564_v26, 0.0 }
 0x1aa   : > { %v589_v29 = vpack.c.bf16 %v581_v28, %v580_v27 }
 0x1ac   : > { %1072 = vmatmul.msk.bf16.vlgmr.msrb.gmra.mxu3 %vm625_vm1, %v589_v29 }
 0x1b9   : > { %v659_v31 = vpop.f32.mrf.mxu2 }
 0x1ba   : > { %v660_v32 = vadd.f32 %v659_v31, %v599_v30 }
 0x1bc   : > { %700 = vst.msk [vmem:[%s1387_s26] sm:$0xff] %vm699_vm2, %v660_v32 }
 0x1c1   : > { %v661_v33 = vpop.f32.mrf.mxu2 }
 0x1c2   : > { %v662_v34 = vadd.f32 %v661_v33, %v599_v30 }
 0x1c4   : > { %701 = vst.msk [vmem:[%s1387_s26 + $0x8] sm:$0xff] %vm699_vm2, %v662_v34 }
 0x1c9   : > { %v664_v35 = vpop.f32.mrf.mxu2 }
 0x1ca   : > { %v665_v36 = vadd.f32 %v664_v35, %v599_v30 }
 0x1cc   : > { %702 = vst.msk [vmem:[%s1387_s26 + $0x10] sm:$0xff] %vm699_vm2, %v665_v36 }
 0x1d1   : > { %v666_v37 = vpop.f32.mrf.mxu2 }
 0x1d2   : > { %v667_v39 = vadd.f32 %v666_v37, %v599_v30 }
 0x1d4   : > { %703 = vst.msk [vmem:[%s1387_s26 + $0x18] sm:$0xff] %vm699_vm2, %v667_v39 }
 0x1d9   : > { %v669_v2 = vpop.f32.mrf.mxu2 }
 0x1da   : > { %v670_v40 = vadd.f32 %v669_v2, %v599_v30 }
 0x1dc   : > { %704 = vst.msk [vmem:[%s1387_s26 + $0x20] sm:$0xff] %vm699_vm2, %v670_v40 }
 0x1e1   : > { %v671_v41 = vpop.f32.mrf.mxu2 }
 0x1e2   : > { %v672_v42 = vadd.f32 %v671_v41, %v599_v30 }
 0x1e4   : > { %705 = vst.msk [vmem:[%s1387_s26 + $0x28] sm:$0xff] %vm699_vm2, %v672_v42 }
 0x1e9   : > { %v674_v43 = vpop.f32.mrf.mxu2 }
 0x1ea   : > { %v675_v44 = vadd.f32 %v674_v43, %v599_v30 }
 0x1ec   : > { %706 = vst.msk [vmem:[%s1387_s26 + $0x30] sm:$0xff] %vm699_vm2, %v675_v44 }
 0x1f1   : > { %v676_v45 = vpop.f32.mrf.mxu2 }
 0x1f2   : > { %v677_v46 = vadd.f32 %v676_v45, %v599_v30 }
 0x1f4   : > { %707 = vst.msk [vmem:[%s1387_s26 + $0x38] sm:$0xff] %vm699_vm2, %v677_v46 }
 0x1f9   : > { %v679_v47 = vpop.f32.mrf.mxu2 }
 0x1fa   : > { %v680_v38 = vadd.f32 %v679_v47, %v599_v30 }
 0x1fc   : > { %708 = vst.msk [vmem:[%s1387_s26 + $0x40] sm:$0xff] %vm699_vm2, %v680_v38 }
 0x201   : > { %v681_v48 = vpop.f32.mrf.mxu2 }
 0x202   : > { %v682_v49 = vadd.f32 %v681_v48, %v599_v30 }
 0x204   : > { %709 = vst.msk [vmem:[%s1387_s26 + $0x48] sm:$0xff] %vm699_vm2, %v682_v49 }
 0x209   : > { %v684_v50 = vpop.f32.mrf.mxu2 }
 0x20a   : > { %v685_v51 = vadd.f32 %v684_v50, %v599_v30 }
 0x20c   : > { %710 = vst.msk [vmem:[%s1387_s26 + $0x50] sm:$0xff] %vm699_vm2, %v685_v51 }
 0x211   : > { %v686_v1 = vpop.f32.mrf.mxu2 }
 0x212   : > { %v687_v52 = vadd.f32 %v686_v1, %v599_v30 }
 0x214   : > { %711 = vst.msk [vmem:[%s1387_s26 + $0x58] sm:$0xff] %vm699_vm2, %v687_v52 }
 0x21f   : > { %v689_v53 = vpop.f32.mrf.mxu2 }
 0x220   : > { %v690_v54 = vadd.f32 %v689_v53, %v599_v30 }
 0x222   : > { %712 = vst.msk [vmem:[%s1387_s26 + $0x60] sm:$0xff] %vm699_vm2, %v690_v54 }
 0x227   : > { %v691_v55 = vpop.f32.mrf.mxu2 }
 0x228   : > { %v692_v56 = vadd.f32 %v691_v55, %v599_v30 }
 0x22a   : > { %713 = vst.msk [vmem:[%s1387_s26 + $0x68] sm:$0xff] %vm699_vm2, %v692_v56 }
 0x22f   : > { %v694_v57 = vpop.f32.mrf.mxu3 }
 0x230   : > { %v695_v58 = vadd.f32 %v694_v57, %v599_v30 }
 0x232   : > { %714 = vst.msk [vmem:[%s1387_s26 + $0x70] sm:$0xff] %vm699_vm2, %v695_v58 }
 0x237   : > { %v696_v59 = vpop.f32.mrf.mxu3 }
 0x238   : > { %v697_v60 = vadd.f32 %v696_v59, %v599_v30 }
 0x23a   : > { %715 = vst.msk [vmem:[%s1387_s26 + $0x78] sm:$0xff] %vm699_vm2, %v697_v60 }
 0x23b PF: > { %722 = sbr.rel (!%p1357_p4) target bundleno = 624 (0x270), region = 56  ;;  %s724_s23 = ssub.s32 (%p1357_p4), 25, %s1362_s11 }
 0x23c   : > { %s1526_s10 = scalar_lea.vmem (%p1357_p4), %s1630_s7, %s999_s19   ;;  %p725_p9 = scmp.lt.s32.totalorder (%p1357_p4), %s724_s23, 16 }
 0x240   : > { %s1641_s23 = smov (!%p725_p9, %s724_s23), 16 }
 0x241   : > { %s1075_s12 = sshll.u32 %s1641_s23, 3 }
 0x242   : > { %p1078_p10 = scmp.eq.s32.totalorder %s1075_s12, 0 }
 0x243   : > { %s1532_s13 = sshrl.u32 (!%p1078_p10), %s1641_s23, 4 }
 0x244   : > { %733 = sbr.rel (%p1078_p10) target bundleno = 624 (0x270), region = 60  ;;  %p1079_p11 = scmp.le.s32.totalorder (!%p1078_p10), %s1532_s13, 0 }
 0x249   : > { %948 = sbr.rel (%p1079_p11) target bundleno = 607 (0x25f), region = 136  ;;  %s1632_s27 = smov (!%p1079_p11), %s1526_s10 }
 0x24a   : > { %s1633_s9 = smov (!%p1079_p11), %s1387_s26  ;;  %s1541_s11 = smov (!%p1079_p11), 0  }
 0x24b   : > { %s1543_s19 = smov (!%p1079_p11), 0  }
 0x24e LB: >> { %v826_v61 = vld [vmem:[%s1269_s9] sm:$0xff]  ;;  %v828_v62 = vld [vmem:[%s1269_s9 + $0x8] sm:$0xff]  ;;  %v830_v63 = vld [vmem:[%s1269_s9 + $0x10] sm:$0xff]  ;;  %s858_s14 = sadd.s32 1, %s1273_s11  ;;  %s820_s19 = sadd.s32 1, %s1277_s19   ;;  %s1277_s19 = sphi %s1543_s19, %s820_s19   ;;  %s1273_s11 = sphi %s1541_s11, %s1636_s11   ;;  %s1269_s9 = sphi %s1633_s9, %s1635_s9   ;;  %s1265_s27 = sphi %s1632_s27, %s1634_s27  }
 0x24f   : >> { %827 = vst [vmem:[%s1265_s27] sm:$0xff] %v826_v61  ;;  %v832_v0 = vld [vmem:[%s1269_s9 + $0x18] sm:$0xff]  ;;  %p859_p12 = scmp.ge.s32.totalorder %s858_s14, %s1532_s13  ;;  %v834_v3 = vld [vmem:[%s1269_s9 + $0x20] sm:$0xff]  ;;  %v836_v4 = vld [vmem:[%s1269_s9 + $0x28] sm:$0xff]  ;;  %p819_p13 = scmp.ge.s32.totalorder %s820_s19, %s1532_s13 }
 0x250   : >> { %829 = vst [vmem:[%s1265_s27 + $0x8] sm:$0xff] %v828_v62  ;;  %v838_v5 = vld [vmem:[%s1269_s9 + $0x30] sm:$0xff]  ;;  %v840_v6 = vld [vmem:[%s1269_s9 + $0x38] sm:$0xff]  ;;  %v842_v7 = vld [vmem:[%s1269_s9 + $0x40] sm:$0xff] }
 0x251   : >> { %831 = vst [vmem:[%s1265_s27 + $0x10] sm:$0xff] %v830_v63  ;;  %s1643_s14 = smov (%p859_p12, %s858_s14), 0  ;;  %v844_v8 = vld [vmem:[%s1269_s9 + $0x48] sm:$0xff]  ;;  %v846_v9 = vld [vmem:[%s1269_s9 + $0x50] sm:$0xff]  ;;  %v848_v10 = vld [vmem:[%s1269_s9 + $0x58] sm:$0xff] }
 0x252   : >> { %833 = vst [vmem:[%s1265_s27 + $0x18] sm:$0xff] %v832_v0  ;;  %s1080_s24 = sshll.u32 %s1643_s14, 7  ;;  %v850_v11 = vld [vmem:[%s1269_s9 + $0x60] sm:$0xff]  ;;  %v852_v12 = vld [vmem:[%s1269_s9 + $0x68] sm:$0xff]  ;;  %v854_v13 = vld [vmem:[%s1269_s9 + $0x70] sm:$0xff]  ;;  %s1636_s11 = smov %s1643_s14 }
 0x253   : >> { %835 = vst [vmem:[%s1265_s27 + $0x20] sm:$0xff] %v834_v3  ;;  %s863_s15 = scalar_lea.vmem %s1387_s26, %s1080_s24 [#allocation2]   ;;  %s864_s16 = scalar_lea.vmem %s1526_s10, %s1080_s24   ;;  %v856_v14 = vld [vmem:[%s1269_s9 + $0x78] sm:$0xff] }
 0x254   : >> { %837 = vst [vmem:[%s1265_s27 + $0x28] sm:$0xff] %v836_v4  ;;  %s1635_s9 = smov %s863_s15 }
 0x255   : >> { %839 = vst [vmem:[%s1265_s27 + $0x30] sm:$0xff] %v838_v5 }
 0x256   : >> { %841 = vst [vmem:[%s1265_s27 + $0x38] sm:$0xff] %v840_v6 }
 0x257   : >> { %843 = vst [vmem:[%s1265_s27 + $0x40] sm:$0xff] %v842_v7 }
 0x258   : >> { %845 = vst [vmem:[%s1265_s27 + $0x48] sm:$0xff] %v844_v8 }
 0x259   : >> { %847 = vst [vmem:[%s1265_s27 + $0x50] sm:$0xff] %v846_v9 }
 0x25a   : >> { %849 = vst [vmem:[%s1265_s27 + $0x58] sm:$0xff] %v848_v10  ;;  %822 = sbr.rel (!%p819_p13) target bundleno = 590 (0x24e), region = 142 }
 0x25b   : >> { %851 = vst [vmem:[%s1265_s27 + $0x60] sm:$0xff] %v850_v11 }
 0x25c   : >> { %853 = vst [vmem:[%s1265_s27 + $0x68] sm:$0xff] %v852_v12 }
 0x25d   : >> { %855 = vst [vmem:[%s1265_s27 + $0x70] sm:$0xff] %v854_v13 }
 0x25e   : >> { %857 = vst [vmem:[%s1265_s27 + $0x78] sm:$0xff] %v856_v14  ;;  %s1634_s27 = smov %s864_s16 }
 0x25f PF: > { %s1605_s17 = sand.u32 15, %s1641_s23   ;;  %s1105_s18 = sshll.u32 %s1532_s13, 7 }
 0x260   : > { %s869_s20 = scalar_lea.vmem %s1387_s26, %s1105_s18 [#allocation2]   ;;  %s871_s21 = scalar_lea.vmem %s1526_s10, %s1105_s18  }
 0x261   : > { %p1085_p0 = scmp.le.s32.totalorder %s1605_s17, 0 }
 0x262   : > { %s1279_s22 = smov (!%p1085_p0), %s871_s21   ;;  %s1283_s29 = smov (!%p1085_p0), %s869_s20  }
 0x263   : > { %962 = sbr.rel (%p1085_p0) target bundleno = 624 (0x270), region = 147  ;;  %s1287_s30 = smov (!%p1085_p0), 0  }
 0x264   : > { %s1291_s12 = smov (!%p1085_p0), 0  }
 0x268 LB: >> { %v881_v15 = vld [vmem:[%s1285_s29] sm:$0xff]  ;;  %s883_s23 = sadd.s32 1, %s1289_s30  ;;  %s875_s12 = sadd.s32 1, %s1293_s12   ;;  %s1293_s12 = sphi %s1291_s12, %s875_s12   ;;  %s1289_s30 = sphi %s1287_s30, %s1288_s30   ;;  %s1285_s29 = sphi %s1283_s29, %s888_s29   ;;  %s1281_s22 = sphi %s1279_s22, %s889_s22  }
 0x269   : >> { %882 = vst [vmem:[%s1281_s22] sm:$0xff] %v881_v15  ;;  %p884_p1 = scmp.ge.s32.totalorder %s883_s23, %s1605_s17  ;;  %p874_p2 = scmp.ge.s32.totalorder %s875_s12, %s1605_s17 }
 0x26b   : >> { %s1645_s23 = smov (%p884_p1, %s883_s23), 0  ;;  %877 = sbr.rel (!%p874_p2) target bundleno = 616 (0x268), region = 153 }
 0x26c   : >> { %s1086_s26 = sshll.u32 %s1645_s23, 3  ;;  %s1288_s30 = smov %s1645_s23  }
 0x26d   : >> { %s888_s29 = scalar_lea.vmem %s869_s20, %s1086_s26 [#allocation2]   ;;  %s889_s22 = scalar_lea.vmem %s871_s21, %s1086_s26  }
 0x270 PF: > { %p14_p3 = scmp.ge.s32.totalorder %s1348_s28, 4   ;;  %s1637_s24 = smov %s1257_s25 }
 0x271   : > { %s1638_s25 = smov %s1355_s8  ;;  %s1639_s26 = smov %s1348_s28 }
 0x272   :  { %16 = sbr.rel (!%p14_p3) target bundleno = 2 (0x2), region = 164 }

</bundles_post_ra>
